<compile_context>
chip_gen: v7x
topology: tpu7x:2x2x1
jax: 0.10.0
libtpu: 0.0.40
codegen_flags: <defaults>
</compile_context>

<pallas_src>
import jax
import jax.numpy as jnp
from jax.experimental import pallas as pl
from jax.experimental.pallas import tpu as pltpu
from typing import NamedTuple, Optional


def _round_up(x, m):
    return ((x + m - 1) // m) * m


def _split_dim(size, max_block, align):
    """Pick (#blocks, block_size).  Single full-dim block when it fits (no
    alignment constraint, no padding); otherwise an `align`-multiple block that
    keeps padding to < align elements total per block."""
    if size <= max_block:
        return 1, size
    g = -(-size // max_block)                 # ceil(size / max_block)
    b = _round_up(-(-size // g), align)       # per-block size, aligned
    return g, b


# ---------------------------------------------------------------------------
# Kernels
# ---------------------------------------------------------------------------

def _meta_linear_kernel_single_k(x_ref, w_ref, b_ref, o_ref):
    # One MXU dot per (m, n) tile with the whole K dimension in VMEM.
    # Bias is fused; output written once, directly in the caller's dtype.
    o_ref[...] = (
        jnp.dot(x_ref[...], w_ref[...], preferred_element_type=jnp.float32)
        + b_ref[...]
    ).astype(o_ref.dtype)


def _meta_linear_kernel_multi_k(x_ref, w_ref, b_ref, o_ref):
    # Fallback for very large in_features.  The f32 output block stays resident
    # in VMEM across k (its index_map ignores k), so we accumulate into it
    # directly -- no separate accumulator scratch, bias folded into the init.
    @pl.when(pl.program_id(2) == 0)
    def _():
        o_ref[...] = jnp.broadcast_to(
            b_ref[...].astype(jnp.float32), o_ref.shape
        )

    o_ref[...] += jnp.dot(
        x_ref[...], w_ref[...], preferred_element_type=jnp.float32
    )


# ---------------------------------------------------------------------------
# Parameter preparation (hoist weight.T / padding out of the per-call path)
# ---------------------------------------------------------------------------

class MetaLinearParams(NamedTuple):
    w_t: jax.Array      # (k_p, n_p)  = weight.T, padded only if N or K is tiled
    b_row: jax.Array    # (1, n_p)
    in_features: int
    out_features: int
    bn: int             # N block
    bk: Optional[int]   # K block; None => single full-K block (no reduction grid)


def prepare_meta_linear_params(weight, bias, *, block_n=512, block_k=512,
                               single_k_max=2048, operand_dtype=None):
    """Do the weight transpose (and any N/K padding) once; reuse across calls."""
    out_features, in_features = weight.shape
    assert bias.shape == (out_features,)

    w_t = weight.T
    if operand_dtype is not None:
        w_t = w_t.astype(operand_dtype)
    b_row = bias.reshape(1, out_features)

    # N blocking: full-dim block when it fits, otherwise 256-aligned tiles
    # (v6e/v7x MXU is 2x256x256; 256 also lane-dense for the output stores).
    gn, bn = _split_dim(out_features, block_n, 256)
    n_p = out_features if gn == 1 else gn * bn

    # K blocking: prefer a single full-K block (drops the reduction grid axis).
    if in_features <= single_k_max:
        bk, k_p = None, in_features
    else:
        gk, bk = _split_dim(in_features, block_k, 256)
        k_p = gk * bk

    if n_p != out_features or k_p != in_features:
        w_t = jnp.pad(w_t, ((0, k_p - in_features), (0, n_p - out_features)))
    if n_p != out_features:
        b_row = jnp.pad(b_row, ((0, 0), (0, n_p - out_features)))

    return MetaLinearParams(w_t, b_row, in_features, out_features, bn, bk)


# ---------------------------------------------------------------------------
# Forward
# ---------------------------------------------------------------------------

def meta_linear_apply(x, params: MetaLinearParams, *, block_m=512):
    """y = x @ weight.T + bias with pre-prepared (transposed/padded) params."""
    *lead, in_features = x.shape
    assert in_features == params.in_features
    orig_dtype = x.dtype

    x2 = x.reshape(-1, in_features)
    if x2.dtype != params.w_t.dtype:
        x2 = x2.astype(params.w_t.dtype)
    m = x2.shape[0]

    k_p, n_p = params.w_t.shape
    bn, bk = params.bn, params.bk
    gn = n_p // bn

    # M blocking: full-dim block when it fits (no padding at all); otherwise
    # shrink bm toward ceil(m/gm) (8-aligned) so over-padding is < 8*gm rows
    # and there are >= 2 blocks to shard across v7x's two TensorCores.
    gm, bm = _split_dim(m, block_m, 8)
    m_p = m if gm == 1 else gm * bm

    pad_m = m_p - m
    pad_k = k_p - in_features
    if pad_m or pad_k:
        x2 = jnp.pad(x2, ((0, pad_m), (0, pad_k)))

    cparams = dict(vmem_limit_bytes=48 * 1024 * 1024)

    if bk is None:
        # Hot path: 2-D grid, single fused dot + bias, caller-dtype output.
        out_p = pl.pallas_call(
            _meta_linear_kernel_single_k,
            out_shape=jax.ShapeDtypeStruct((m_p, n_p), orig_dtype),
            grid_spec=pltpu.PrefetchScalarGridSpec(
                num_scalar_prefetch=0,
                grid=(gm, gn),
                in_specs=[
                    pl.BlockSpec((bm, k_p), lambda i, j: (i, 0)),   # x tile
                    pl.BlockSpec((k_p, bn), lambda i, j: (0, j)),   # W^T tile
                    pl.BlockSpec((1, bn), lambda i, j: (0, j)),     # bias row
                ],
                out_specs=pl.BlockSpec((bm, bn), lambda i, j: (i, j)),
            ),
            compiler_params=pltpu.CompilerParams(
                dimension_semantics=("parallel", "parallel"), **cparams
            ),
        )(x2, params.w_t, params.b_row)
    else:
        # Large-K fallback: 3-D grid, accumulate into the f32 output block.
        gk = k_p // bk
        out_p = pl.pallas_call(
            _meta_linear_kernel_multi_k,
            out_shape=jax.ShapeDtypeStruct((m_p, n_p), jnp.float32),
            grid_spec=pltpu.PrefetchScalarGridSpec(
                num_scalar_prefetch=0,
                grid=(gm, gn, gk),
                in_specs=[
                    pl.BlockSpec((bm, bk), lambda i, j, k: (i, k)),
                    pl.BlockSpec((bk, bn), lambda i, j, k: (k, j)),
                    pl.BlockSpec((1, bn), lambda i, j, k: (0, j)),
                ],
                out_specs=pl.BlockSpec((bm, bn), lambda i, j, k: (i, j)),
            ),
            compiler_params=pltpu.CompilerParams(
                dimension_semantics=("parallel", "parallel", "arbitrary"),
                **cparams,
            ),
        )(x2, params.w_t, params.b_row)

    out = out_p
    if m_p != m or n_p != params.out_features:
        out = out[:m, :params.out_features]
    if out.dtype != orig_dtype:
        out = out.astype(orig_dtype)
    return out.reshape(*lead, params.out_features)


def meta_linear_forward(x, weight, bias, *, block_m=512, block_n=512,
                        block_k=512, operand_dtype=None):
    """Convenience wrapper.  When the same MetaLinear weights are applied many
    times, call prepare_meta_linear_params() once and reuse it with
    meta_linear_apply() so the transpose/pad is hoisted out of the hot path."""
    params = prepare_meta_linear_params(
        weight, bias, block_n=block_n, block_k=block_k,
        operand_dtype=operand_dtype)
    return meta_linear_apply(x, params, block_m=block_m)


# ---------------------------------------------------------------------------
# Reference + self-test
# ---------------------------------------------------------------------------

def _reference(x, weight, bias):
    *lead, in_features = x.shape
    y = (
        jnp.dot(
            x.reshape(-1, in_features).astype(jnp.float32),
            weight.astype(jnp.float32).T,
            precision=jax.lax.Precision.HIGHEST,
        )
        + bias.astype(jnp.float32)
    )
    return y.reshape(*lead, weight.shape[0])


if __name__ == "__main__":
    key = jax.random.PRNGKey(0)

    # Case 1: small shapes consistent with MetaLinear usage in the QMIX hypernets.
    k_x, k_w, k_b, key = jax.random.split(key, 4)
    batch, seq, in_features, out_features = 2, 8, 32, 32
    x = jax.random.normal(k_x, (batch, seq, in_features), jnp.float32)
    bound = 1.0 / (in_features ** 0.5)
    weight = jax.random.uniform(
        k_w, (out_features, in_features), jnp.float32, -bound, bound)
    bias = jax.random.uniform(k_b, (out_features,), jnp.float32, -bound, bound)

    y = meta_linear_forward(x, weight, bias)
    y = jax.block_until_ready(y)
    ref = _reference(x, weight, bias)
    assert y.shape == (batch, seq, out_features)
    assert jnp.allclose(y, ref, atol=1e-3, rtol=1e-3), "case 1: mismatch"

    # Case 2: ragged M and non-128-aligned N/K (full-dim blocks, zero padding).
    k_x2, k_w2, k_b2, key = jax.random.split(key, 4)
    b2, t2, in2, out2 = 3, 7, 96, 200
    x2 = jax.random.normal(k_x2, (b2, t2, in2), jnp.float32)
    bound2 = 1.0 / (in2 ** 0.5)
    weight2 = jax.random.uniform(k_w2, (out2, in2), jnp.float32, -bound2, bound2)
    bias2 = jax.random.uniform(k_b2, (out2,), jnp.float32, -bound2, bound2)

    y2 = meta_linear_forward(x2, weight2, bias2)
    y2 = jax.block_until_ready(y2)
    ref2 = _reference(x2, weight2, bias2)
    assert y2.shape == (b2, t2, out2)
    assert jnp.allclose(y2, ref2, atol=1e-3, rtol=1e-3), "case 2: mismatch"

    # Case 3: optional bf16-operand mode (f32 accumulation), hoisted params reuse.
    params_bf16 = prepare_meta_linear_params(
        weight2, bias2, operand_dtype=jnp.bfloat16)
    y3 = jax.block_until_ready(meta_linear_apply(x2, params_bf16))
    assert y3.shape == (b2, t2, out2)
    assert jnp.allclose(y3, ref2, atol=5e-2, rtol=5e-2), "case 3: mismatch"

    print("KERNEL_OK")
</pallas_src>

<mosaic_0001>
module attributes {stable_mosaic.version = 11 : i64} {
  func.func @_meta_linear_kernel_single_k(%arg0: i32, %arg1: i32, %arg2: memref<16x32xf32, #tpu.memory_space<vmem>>, %arg3: memref<32x32xf32, #tpu.memory_space<vmem>>, %arg4: memref<1x32xf32, #tpu.memory_space<vmem>>, %arg5: memref<16x32xf32, #tpu.memory_space<vmem>>) attributes {dimension_semantics = [#tpu.dimension_semantics<parallel>, #tpu.dimension_semantics<parallel>], iteration_bounds = array<i64: 1, 1>, scalar_prefetch = 0 : i64, scratch_operands = 0 : i64, tpu.core_type = #tpu.core_type<tc>, window_params = [{transform_indices = @transform_0, window_bounds = array<i64: 16, 32>}, {transform_indices = @transform_1, window_bounds = array<i64: 32, 32>}, {transform_indices = @transform_2, window_bounds = array<i64: 1, 32>}, {transform_indices = @transform_3, window_bounds = array<i64: 16, 32>}]} {
    %c0 = arith.constant 0 : index
    %c0_0 = arith.constant 0 : index
    %0 = vector.load %arg2[%c0, %c0_0] : memref<16x32xf32, #tpu.memory_space<vmem>>, vector<16x32xf32>
    %c0_1 = arith.constant 0 : index
    %c0_2 = arith.constant 0 : index
    %1 = vector.load %arg3[%c0_1, %c0_2] : memref<32x32xf32, #tpu.memory_space<vmem>>, vector<32x32xf32>
    %cst = arith.constant dense<0.000000e+00> : vector<16x32xf32>
    %2 = tpu.matmul %0, %1, %cst {dimension_numbers = #tpu.dot_dimension_numbers<[1], [0], [0], [1], [0, 0, 1, 1], [], []>} : vector<16x32xf32>, vector<32x32xf32>, vector<16x32xf32> -> vector<16x32xf32>
    %c0_3 = arith.constant 0 : index
    %c0_4 = arith.constant 0 : index
    %3 = vector.load %arg4[%c0_3, %c0_4] : memref<1x32xf32, #tpu.memory_space<vmem>>, vector<1x32xf32>
    %4 = vector.broadcast %3 : vector<1x32xf32> to vector<16x32xf32>
    %5 = arith.addf %2, %4 : vector<16x32xf32>
    %c0_5 = arith.constant 0 : index
    %c0_6 = arith.constant 0 : index
    %6 = vector.load %arg5[%c0_5, %c0_6] : memref<16x32xf32, #tpu.memory_space<vmem>>, vector<16x32xf32>
    tpu.vector_store %arg5[%c0_5, %c0_6], %5 {strides = array<i32>} : memref<16x32xf32, #tpu.memory_space<vmem>>, vector<16x32xf32>,
    return
  }
  func.func @transform_0(%arg0: i32, %arg1: i32) -> (i32, i32) {
    %c0_i32 = arith.constant 0 : i32
    %c0_i32_0 = arith.constant 0 : i32
    return %arg0, %c0_i32 : i32, i32
  }
  func.func @transform_1(%arg0: i32, %arg1: i32) -> (i32, i32) {
    %c0_i32 = arith.constant 0 : i32
    %c0_i32_0 = arith.constant 0 : i32
    return %c0_i32, %arg1 : i32, i32
  }
  func.func @transform_2(%arg0: i32, %arg1: i32) -> (i32, i32) {
    %c0_i32 = arith.constant 0 : i32
    %c0_i32_0 = arith.constant 0 : i32
    return %c0_i32, %arg1 : i32, i32
  }
  func.func @transform_3(%arg0: i32, %arg1: i32) -> (i32, i32) {
    %c0_i32 = arith.constant 0 : i32
    return %arg0, %arg1 : i32, i32
  }
}

</mosaic_0001>

<bundles_post_ra>
// kernel: tpu_custom_call.1
= control target key start
LH: loop header
LB: loop body
LE: loop exit
PB: predicated region body
PF: predicated region fallthrough
CT: control target
= control target key end

     0   :  { %8 = vsyncpa [#allocation3], 0  ;;  %s340_s0 = inlined_call_operand.hbm [shape: f32[16,32], index: 0, kind: input, shape index: {}]   ;;  %s341_s1 = inlined_call_operand.hbm [shape: f32[32,32], index: 1, kind: input, shape index: {}]   ;;  %s342_s2 = inlined_call_operand.vmem [shape: f32[1,32], index: 2, kind: input, shape index: {}]   ;;  %s343_s3 = inlined_call_operand.hbm [shape: f32[16,32], index: 3, kind: output, shape index: {}]  }
   0x1   :  { %9 = vsyncpa [#allocation6], 0 }
   0x2   :  { %10 = vsyncpa [#allocation4], 0  ;;  %s263_s12 = smov [#allocation2]   ;;  %s191_s16 = scalar_lea.hbm %s340_s0, 256 }
   0x3   :  { %s16_s13 = sshll.u32 %s263_s12, 4  ;;  %p192_p0 = scmp.ne.s32.totalorder %s340_s0, %s191_s16  ;;  %s17_s13 = int_to_ptr.vmem [resolvable:$true] %s16_s13 }
   0x4   :  { %p195_p1 = scmp.lt.u32.totalorder %s191_s16, %s340_s0 }
   0x6   :  { %p197_p2 = pnand %p195_p1, %p192_p0 }
   0x8   :  { %200 = shalt.err (!%p197_p2)
}
   0x9   :  { %s201_s21 = scalar_lea.vmem %s17_s13, 256  ;;  %p206_p4 = scmp.lt.s32.totalorder %s17_s13, %s17_s13 }
   0xa   :  { %p202_p3 = scmp.ne.s32.totalorder %s17_s13, %s201_s21  ;;  %p207_p5 = scmp.lt.s32.totalorder %s201_s21, %s201_s21 }
   0xc   :  { %p208_p6 = por %p207_p5, %p206_p4 }
   0xe   :  { %p209_p7 = pnand %p208_p6, %p202_p3 }
  0x10   :  { %212 = shalt.err (!%p209_p7)
}
  0x11   :  { %s264_s22 = smov 128   ;;  %s265_s23 = smov 8  }
  0x12   :  { %22 = dma.hbm_to_vmem [thread:$0]  %s340_s0, 256, %s17_s13, [#allocation3], %s264_s22, %s264_s22, %s265_s23  }
  0x13   :  { %s266_s26 = smov [#allocation5]   ;;  %s213_s30 = scalar_lea.hbm %s341_s1, 512 }
  0x14   :  { %s28_s27 = sshll.u32 %s266_s26, 4  ;;  %p214_p8 = scmp.ne.s32.totalorder %s341_s1, %s213_s30  ;;  %s29_s27 = int_to_ptr.vmem [resolvable:$true] %s28_s27 }
  0x15   :  { %p217_p9 = scmp.lt.u32.totalorder %s213_s30, %s341_s1 }
  0x17   :  { %p219_p10 = pnand %p217_p9, %p214_p8 }
  0x19   :  { %222 = shalt.err (!%p219_p10)
}
  0x1a   :  { %s223_s8 = scalar_lea.vmem %s29_s27, 512  ;;  %p228_p12 = scmp.lt.s32.totalorder %s29_s27, %s29_s27 }
  0x1b   :  { %p224_p11 = scmp.ne.s32.totalorder %s29_s27, %s223_s8  ;;  %p229_p13 = scmp.lt.s32.totalorder %s223_s8, %s223_s8 }
  0x1d   :  { %p230_p0 = por %p229_p13, %p228_p12 }
  0x1f   :  { %p231_p1 = pnand %p230_p0, %p224_p11 }
  0x21   :  { %234 = shalt.err (!%p231_p1)
}
  0x22   :  { %34 = dma.hbm_to_vmem [thread:$0]  %s341_s1, 512, %s29_s27, [#allocation6], %s264_s22, %s264_s22, %s265_s23  }
  0x23   :  { %257 = dma.done.wait [#allocation3], 256  }
  0x24   :  { %258 = vsyncadd [#allocation3], 4294967040 }
  0x25   :  { %259 = dma.done.wait [#allocation6], 512  }
  0x26   :  { %260 = vsyncadd [#allocation6], 4294966784  ;;  %vm56_vm0 = vcmask 261120   ;;  %v45_v0 = vld [vmem:[#allocation5] sm:$0xff]  ;;  %v46_v1 = vld [vmem:[#allocation5 + $0x8] sm:$0xff]  ;;  %s267_s11 = smov [#allocation7]  }
  0x27   :  { %v47_v2 = vld [vmem:[#allocation5 + $0x10] sm:$0xff]  ;;  %v178_v3 = vpack.c.bf16 %v46_v1, %v45_v0  ;;  %v48_v4 = vld [vmem:[#allocation5 + $0x18] sm:$0xff]  ;;  %s145_s12 = sshll.u32 %s267_s11, 4  ;;  %s146_s12 = int_to_ptr.vmem [resolvable:$true] %s145_s12 }
  0x28   :  { %v43_v5 = vld [vmem:[#allocation2] sm:$0xff]  ;;  %v182_v6 = vpack.c.bf16 %v48_v4, %v47_v2  ;;  %v44_v7 = vld [vmem:[#allocation2 + $0x8] sm:$0xff]  ;;  %s235_s13 = scalar_lea.vmem %s146_s12, 256  ;;  %p240_p3 = scmp.lt.s32.totalorder %s146_s12, %s146_s12 }
  0x29   :  { %175 = vmatprep.mubr.msk.f32.mxu0 %vm56_vm0, %v43_v5  ;;  %179 = vmatprep.subr.bf16.mxu0 %v178_v3  ;;  %v158_v8 = vld [vmem:[%s342_s2] ss:$0 sm:$0xff]  ;;  %p236_p2 = scmp.ne.s32.totalorder %s146_s12, %s235_s13  ;;  %p241_p4 = scmp.lt.s32.totalorder %s235_s13, %s235_s13 }
  0x2a   :  { %181 = vmatpush3.bf16.msra.mxu0 %v178_v3 }
  0x2b   :  { %183 = vmatprep.subr.bf16.mxu0 %v182_v6  ;;  %p242_p5 = por %p241_p4, %p240_p3 }
  0x2d   :  { %p243_p6 = pnand %p242_p5, %p236_p2 }
  0x2e   :  { %185 = vmatpush3.bf16.msra.mxu0 %v182_v6 }
  0x31   :  { %176 = vmatmul.mubr.msk.f32.vlgmr.msra.gmra.mrb[0].mxu0 %vm56_vm0, %v44_v7 }
 0x104   :  { %v177_v9 = vpop.f32.mrb[0].mxu0 }
 0x105   :  { %v135_v10 = vadd.f32 %v177_v9, %v158_v8  ;;  %v129_v11 = vpop.f32.mrb[1].mxu0 }
 0x106   :  { %v130_v12 = vadd.f32 %v158_v8, %v129_v11 }
 0x107   :  { %139 = vst.msk [vmem:[#allocation7 + $0x8] sm:$0xff] %vm56_vm0, %v135_v10 }
 0x108   :  { %138 = vst.msk [vmem:[#allocation7] sm:$0xff] %vm56_vm0, %v130_v12 }
 0x109   :  { %246 = shalt.err (!%p243_p6)
}
 0x10a   :  { %s247_s15 = scalar_lea.hbm %s343_s3, 256 }
 0x10b   :  { %p248_p7 = scmp.ne.s32.totalorder %s343_s3, %s247_s15  ;;  %p251_p8 = scmp.lt.u32.totalorder %s247_s15, %s343_s3 }
 0x10d   :  { %p253_p9 = pnand %p251_p8, %p248_p7 }
 0x10f   :  { %256 = shalt.err (!%p253_p9)
}
 0x110   :  { %151 = dma.vmem_to_hbm [thread:$0]  %s146_s12, 256, %s343_s3, [#allocation4], %s264_s22, %s264_s22, %s265_s23  }
 0x111   :  { %261 = dma.done.wait [#allocation4], 256  }
 0x112   :  { %262 = vsyncadd [#allocation4], 4294967040 }
 0x113   :  { %155 = vsyncpa [#allocation3], 1 }
 0x114   :  { %156 = vsyncpa [#allocation6], 1 }
 0x115   :  { %157 = vsyncpa [#allocation4], 1 }

</bundles_post_ra>
